<compile_context>
chip_gen: v6e
topology: v6e:2x2x1
jax: 0.10.0
libtpu: 0.0.40
codegen_flags: <defaults>
</compile_context>

<pallas_src>
import functools

import jax
import jax.numpy as jnp
from jax import lax
from jax.experimental import pallas as pl
from jax.experimental.pallas import tpu as pltpu


_FUSED_SLAB_BYTES = 2 * 1024 * 1024   # per-sample (C, HW) f32 budget for fused path
_TILE_SLAB_BYTES = 2 * 1024 * 1024    # per-tile (C, Ts) f32 budget for tiled path
_VMEM_LIMIT_BYTES = 32 * 1024 * 1024  # safe on v5e/v6e (128 MiB) and v7x (64 MiB)


def _group_mask(gid_row, gid_col):
    # (C, C) f32: M[i, j] = 1 iff channels i and j belong to the same group.
    return (gid_row == gid_col).astype(jnp.float32)


# ---------------------------------------------------------------------------
# Fused single-pass kernel: one grid step handles a full (C, HW) sample slab.
# ---------------------------------------------------------------------------
def _gn_fused_kernel(x_ref, w_ref, b_ref, gr_ref, gc_ref, o_ref, *, eps, inv_count):
    # x_ref: (C, HW); w_ref/b_ref: (C, 1) f32; gr_ref: (C, 1) i32; gc_ref: (1, C) i32
    x = x_ref[...].astype(jnp.float32)                       # (C, HW)
    m = _group_mask(gr_ref[...], gc_ref[...])                # (C, C)

    # Two-pass (numerically safe) group mean / variance.
    csum = jnp.sum(x, axis=-1, keepdims=True)                # (C, 1) per-channel
    mean = jnp.dot(m, csum, preferred_element_type=jnp.float32) * inv_count  # (C, 1)
    xc = x - mean                                            # centered
    cssq = jnp.sum(xc * xc, axis=-1, keepdims=True)          # (C, 1)
    var = jnp.dot(m, cssq, preferred_element_type=jnp.float32) * inv_count   # (C, 1)
    inv_std = lax.rsqrt(var + eps)                           # (C, 1)

    scale = inv_std * w_ref[...]                             # (C, 1)
    o_ref[...] = (xc * scale + b_ref[...]).astype(o_ref.dtype)


# ---------------------------------------------------------------------------
# Tiled two-sweep kernels.
# ---------------------------------------------------------------------------
def _gn_stats_kernel(x_ref, w_ref, b_ref, gr_ref, gc_ref,
                     scale_ref, shift_ref, sum_sc, ssq_sc, *, eps, inv_count):
    # x_ref: (C, Ts); scale_ref/shift_ref: (C, 1) f32 outputs (resident per n).
    s = pl.program_id(1)

    @pl.when(s == 0)
    def _():
        sum_sc[...] = jnp.zeros_like(sum_sc)
        ssq_sc[...] = jnp.zeros_like(ssq_sc)

    # Fused single pass over the tile: sum and sum-of-squares together.
    x = x_ref[...].astype(jnp.float32)
    sum_sc[...] += jnp.sum(x, axis=-1, keepdims=True)
    ssq_sc[...] += jnp.sum(x * x, axis=-1, keepdims=True)

    @pl.when(s == pl.num_programs(1) - 1)
    def _():
        m = _group_mask(gr_ref[...], gc_ref[...])            # (C, C)
        gsum = jnp.dot(m, sum_sc[...], preferred_element_type=jnp.float32)
        gssq = jnp.dot(m, ssq_sc[...], preferred_element_type=jnp.float32)
        mean = gsum * inv_count                              # (C, 1)
        var = jnp.maximum(gssq * inv_count - mean * mean, 0.0)
        inv_std = lax.rsqrt(var + eps)
        scale = inv_std * w_ref[...]                         # fold affine into scale/shift
        scale_ref[...] = scale
        shift_ref[...] = b_ref[...] - mean * scale


def _gn_apply_kernel(x_ref, scale_ref, shift_ref, o_ref):
    # Single FMA per element; (C,1) scale/shift lane-broadcast over (C, Ts).
    x = x_ref[...].astype(jnp.float32)
    o_ref[...] = (x * scale_ref[...] + shift_ref[...]).astype(o_ref.dtype)


# ---------------------------------------------------------------------------
# Wrapper
# ---------------------------------------------------------------------------
def _pick_spatial_tile(hw, c):
    """Largest divisor of hw that is a multiple of 128 and fits the tile budget."""
    if hw % 128 != 0:
        return hw  # block last dim must equal the full dim if not 128-divisible
    cap = max(128, (_TILE_SLAB_BYTES // (4 * c)) // 128 * 128)
    best = 128
    for t in range(128, min(hw, cap) + 1, 128):
        if hw % t == 0:
            best = t
    return best


def group_norm_pallas(x, weight, bias, num_groups=32, min_channels_per_group=4,
                      eps=1e-5, force_tiled=False, spatial_tile=None):
    """x: (N, C, H, W); weight/bias: (C,). Matches torch.nn.functional.group_norm."""
    N, C, H, W = x.shape
    G = min(num_groups, C // min_channels_per_group)
    assert C % G == 0, "num_channels must be divisible by num_groups"
    cpg = C // G
    HW = H * W
    inv_count = 1.0 / float(cpg * HW)

    x_r = x.reshape(N, C, HW)
    w_r = weight.reshape(C, 1).astype(jnp.float32)            # tiny, pre-cast once
    b_r = bias.reshape(C, 1).astype(jnp.float32)
    gid = jnp.arange(C, dtype=jnp.int32) // cpg                # per-channel group id
    gid_row = gid.reshape(C, 1)
    gid_col = gid.reshape(1, C)

    fused_ok = (C * HW * 4 <= _FUSED_SLAB_BYTES) and not force_tiled

    if fused_ok:
        kernel = functools.partial(_gn_fused_kernel, eps=eps, inv_count=inv_count)
        out = pl.pallas_call(
            kernel,
            out_shape=jax.ShapeDtypeStruct((N, C, HW), x.dtype),
            grid_spec=pltpu.PrefetchScalarGridSpec(
                num_scalar_prefetch=0,
                grid=(N,),
                in_specs=[
                    pl.BlockSpec((None, C, HW), lambda n: (n, 0, 0)),
                    pl.BlockSpec((C, 1), lambda n: (0, 0)),
                    pl.BlockSpec((C, 1), lambda n: (0, 0)),
                    pl.BlockSpec((C, 1), lambda n: (0, 0)),
                    pl.BlockSpec((1, C), lambda n: (0, 0)),
                ],
                out_specs=pl.BlockSpec((None, C, HW), lambda n: (n, 0, 0)),
            ),
            compiler_params=pltpu.CompilerParams(
                dimension_semantics=("parallel",),
                vmem_limit_bytes=_VMEM_LIMIT_BYTES),
        )(x_r, w_r, b_r, gid_row, gid_col)
        return out.reshape(N, C, H, W)

    # --- tiled two-sweep path ---
    Ts = spatial_tile if spatial_tile is not None else _pick_spatial_tile(HW, C)
    assert HW % Ts == 0 and (Ts % 128 == 0 or Ts == HW)
    S_tiles = HW // Ts

    stats_kernel = functools.partial(_gn_stats_kernel, eps=eps, inv_count=inv_count)
    scale, shift = pl.pallas_call(
        stats_kernel,
        out_shape=(jax.ShapeDtypeStruct((N, C, 1), jnp.float32),
                   jax.ShapeDtypeStruct((N, C, 1), jnp.float32)),
        grid_spec=pltpu.PrefetchScalarGridSpec(
            num_scalar_prefetch=0,
            grid=(N, S_tiles),
            in_specs=[
                pl.BlockSpec((None, C, Ts), lambda n, s: (n, 0, s)),
                pl.BlockSpec((C, 1), lambda n, s: (0, 0)),
                pl.BlockSpec((C, 1), lambda n, s: (0, 0)),
                pl.BlockSpec((C, 1), lambda n, s: (0, 0)),
                pl.BlockSpec((1, C), lambda n, s: (0, 0)),
            ],
            out_specs=[
                pl.BlockSpec((None, C, 1), lambda n, s: (n, 0, 0)),
                pl.BlockSpec((None, C, 1), lambda n, s: (n, 0, 0)),
            ],
            scratch_shapes=[pltpu.VMEM((C, 1), jnp.float32),
                            pltpu.VMEM((C, 1), jnp.float32)],
        ),
        compiler_params=pltpu.CompilerParams(
            dimension_semantics=("parallel", "arbitrary"),
            vmem_limit_bytes=_VMEM_LIMIT_BYTES),
    )(x_r, w_r, b_r, gid_row, gid_col)

    out = pl.pallas_call(
        _gn_apply_kernel,
        out_shape=jax.ShapeDtypeStruct((N, C, HW), x.dtype),
        grid_spec=pltpu.PrefetchScalarGridSpec(
            num_scalar_prefetch=0,
            grid=(N, S_tiles),
            in_specs=[
                pl.BlockSpec((None, C, Ts), lambda n, s: (n, 0, s)),
                pl.BlockSpec((None, C, 1), lambda n, s: (n, 0, 0)),
                pl.BlockSpec((None, C, 1), lambda n, s: (n, 0, 0)),
            ],
            out_specs=pl.BlockSpec((None, C, Ts), lambda n, s: (n, 0, s)),
        ),
        compiler_params=pltpu.CompilerParams(
            dimension_semantics=("parallel", "parallel"),
            vmem_limit_bytes=_VMEM_LIMIT_BYTES),
    )(x_r, scale, shift)
    return out.reshape(N, C, H, W)


# ---------------------------------------------------------------------------
# Pure-JAX reference (matches torch.nn.functional.group_norm)
# ---------------------------------------------------------------------------
def group_norm_ref(x, weight, bias, num_groups=32, min_channels_per_group=4, eps=1e-5):
    N, C, H, W = x.shape
    G = min(num_groups, C // min_channels_per_group)
    cpg = C // G
    xr = x.reshape(N, G, cpg * H * W).astype(jnp.float32)
    mean = jnp.mean(xr, axis=-1, keepdims=True)
    var = jnp.mean((xr - mean) ** 2, axis=-1, keepdims=True)
    y = ((xr - mean) * lax.rsqrt(var + eps)).reshape(N, C, H, W)
    y = (y * weight.astype(jnp.float32)[None, :, None, None]
         + bias.astype(jnp.float32)[None, :, None, None])
    return y.astype(x.dtype)


if __name__ == "__main__":
    key = jax.random.PRNGKey(0)
    N, C, H, W = 2, 16, 16, 16            # num_groups = min(32, 16 // 4) = 4
    kx, kw, kb = jax.random.split(key, 3)

    # Non-zero mean input and non-trivial affine to exercise the full path.
    x = jax.random.normal(kx, (N, C, H, W), dtype=jnp.float32) * 2.0 + 3.0
    weight = 1.0 + 0.1 * jax.random.normal(kw, (C,), dtype=jnp.float32)
    bias = 0.1 * jax.random.normal(kb, (C,), dtype=jnp.float32)

    ref = group_norm_ref(x, weight, bias)

    # Fused single-pass path (whole sample resident).
    out_fused = jax.block_until_ready(group_norm_pallas(x, weight, bias))
    assert out_fused.shape == (N, C, H, W)
    assert jnp.allclose(out_fused, ref, atol=1e-4, rtol=1e-4)

    # Tiled two-sweep path (spatial tile 128 -> 2 tiles/sample) to exercise
    # the accumulator + scale/shift kernels on-device as well.
    out_tiled = jax.block_until_ready(
        group_norm_pallas(x, weight, bias, force_tiled=True, spatial_tile=128))
    assert jnp.allclose(out_tiled, ref, atol=1e-4, rtol=1e-4)

    print("KERNEL_OK")
</pallas_src>

<mosaic_0001>
module attributes {stable_mosaic.version = 11 : i64} {
  func.func @_gn_fused_kernel(%arg0: i32, %arg1: memref<1x16x256xf32, #tpu.memory_space<vmem>>, %arg2: memref<16x1xf32, #tpu.memory_space<vmem>>, %arg3: memref<16x1xf32, #tpu.memory_space<vmem>>, %arg4: memref<16x1xi32, #tpu.memory_space<vmem>>, %arg5: memref<1x16xi32, #tpu.memory_space<vmem>>, %arg6: memref<1x16x256xf32, #tpu.memory_space<vmem>>) attributes {dimension_semantics = [#tpu.dimension_semantics<parallel>], iteration_bounds = array<i64: 2>, scalar_prefetch = 0 : i64, scratch_operands = 0 : i64, tpu.core_type = #tpu.core_type<tc>, window_params = [{transform_indices = @transform_0, window_bounds = array<i64: 1, 16, 256>}, {pipeline_mode = #tpu.pipeline_mode<synchronous>, transform_indices = @transform_1, window_bounds = array<i64: 16, 1>}, {pipeline_mode = #tpu.pipeline_mode<synchronous>, transform_indices = @transform_2, window_bounds = array<i64: 16, 1>}, {pipeline_mode = #tpu.pipeline_mode<synchronous>, transform_indices = @transform_3, window_bounds = array<i64: 16, 1>}, {pipeline_mode = #tpu.pipeline_mode<synchronous>, transform_indices = @transform_4, window_bounds = array<i64: 1, 16>}, {transform_indices = @transform_5, window_bounds = array<i64: 1, 16, 256>}]} {
    %c0 = arith.constant 0 : index
    %c0_0 = arith.constant 0 : index
    %c0_1 = arith.constant 0 : index
    %0 = vector.load %arg1[%c0, %c0_0, %c0_1] : memref<1x16x256xf32, #tpu.memory_space<vmem>>, vector<1x16x256xf32>
    %1 = vector.shape_cast %0 : vector<1x16x256xf32> to vector<16x256xf32>
    %c0_2 = arith.constant 0 : index
    %c0_3 = arith.constant 0 : index
    %2 = vector.load %arg4[%c0_2, %c0_3] : memref<16x1xi32, #tpu.memory_space<vmem>>, vector<16x1xi32>
    %c0_4 = arith.constant 0 : index
    %c0_5 = arith.constant 0 : index
    %3 = vector.load %arg5[%c0_4, %c0_5] : memref<1x16xi32, #tpu.memory_space<vmem>>, vector<1x16xi32>
    %4 = vector.broadcast %2 : vector<16x1xi32> to vector<16x16xi32>
    %5 = vector.broadcast %3 : vector<1x16xi32> to vector<16x16xi32>
    %6 = arith.cmpi eq, %4, %5 : vector<16x16xi32>
    %7 = arith.extui %6 : vector<16x16xi1> to vector<16x16xi32>
    %8 = arith.sitofp %7 : vector<16x16xi32> to vector<16x16xf32>
    %cst = arith.constant dense<0.000000e+00> : vector<16xf32>
    %9 = vector.multi_reduction <add>, %1, %cst [1] : vector<16x256xf32> to vector<16xf32>
    %10 = vector.shape_cast %9 : vector<16xf32> to vector<16x1xf32>
    %cst_6 = arith.constant dense<0.000000e+00> : vector<16x1xf32>
    %11 = tpu.matmul %8, %10, %cst_6 {dimension_numbers = #tpu.dot_dimension_numbers<[1], [0], [0], [1], [0, 0, 1, 1], [], []>} : vector<16x16xf32>, vector<16x1xf32>, vector<16x1xf32> -> vector<16x1xf32>
    %cst_7 = arith.constant 9.765625E-4 : f32
    %12 = vector.broadcast %cst_7 : f32 to vector<16x1xf32>
    %13 = arith.mulf %11, %12 : vector<16x1xf32>
    %14 = vector.broadcast %13 : vector<16x1xf32> to vector<16x256xf32>
    %15 = arith.subf %1, %14 : vector<16x256xf32>
    %16 = arith.mulf %15, %15 : vector<16x256xf32>
    %cst_8 = arith.constant dense<0.000000e+00> : vector<16xf32>
    %17 = vector.multi_reduction <add>, %16, %cst_8 [1] : vector<16x256xf32> to vector<16xf32>
    %18 = vector.shape_cast %17 : vector<16xf32> to vector<16x1xf32>
    %cst_9 = arith.constant dense<0.000000e+00> : vector<16x1xf32>
    %19 = tpu.matmul %8, %18, %cst_9 {dimension_numbers = #tpu.dot_dimension_numbers<[1], [0], [0], [1], [0, 0, 1, 1], [], []>} : vector<16x16xf32>, vector<16x1xf32>, vector<16x1xf32> -> vector<16x1xf32>
    %cst_10 = arith.constant 9.765625E-4 : f32
    %20 = vector.broadcast %cst_10 : f32 to vector<16x1xf32>
    %21 = arith.mulf %19, %20 : vector<16x1xf32>
    %cst_11 = arith.constant 9.99999974E-6 : f32
    %22 = vector.broadcast %cst_11 : f32 to vector<16x1xf32>
    %23 = arith.addf %21, %22 : vector<16x1xf32>
    %24 = math.rsqrt %23 : vector<16x1xf32>
    %c0_12 = arith.constant 0 : index
    %c0_13 = arith.constant 0 : index
    %25 = vector.load %arg2[%c0_12, %c0_13] : memref<16x1xf32, #tpu.memory_space<vmem>>, vector<16x1xf32>
    %26 = arith.mulf %24, %25 : vector<16x1xf32>
    %27 = vector.broadcast %26 : vector<16x1xf32> to vector<16x256xf32>
    %28 = arith.mulf %15, %27 : vector<16x256xf32>
    %c0_14 = arith.constant 0 : index
    %c0_15 = arith.constant 0 : index
    %29 = vector.load %arg3[%c0_14, %c0_15] : memref<16x1xf32, #tpu.memory_space<vmem>>, vector<16x1xf32>
    %30 = vector.broadcast %29 : vector<16x1xf32> to vector<16x256xf32>
    %31 = arith.addf %28, %30 : vector<16x256xf32>
    %c0_16 = arith.constant 0 : index
    %c0_17 = arith.constant 0 : index
    %c0_18 = arith.constant 0 : index
    %32 = vector.load %arg6[%c0_16, %c0_17, %c0_18] : memref<1x16x256xf32, #tpu.memory_space<vmem>>, vector<1x16x256xf32>
    %33 = vector.shape_cast %32 : vector<1x16x256xf32> to vector<16x256xf32>
    %34 = vector.shape_cast %31 : vector<16x256xf32> to vector<1x16x256xf32>
    tpu.vector_store %arg6[%c0_16, %c0_17, %c0_18], %34 {strides = array<i32>} : memref<1x16x256xf32, #tpu.memory_space<vmem>>, vector<1x16x256xf32>,
    return
  }
  func.func @transform_0(%arg0: i32) -> (i32, i32, i32) {
    %c0_i32 = arith.constant 0 : i32
    %c0_i32_0 = arith.constant 0 : i32
    %c0_i32_1 = arith.constant 0 : i32
    return %arg0, %c0_i32, %c0_i32_0 : i32, i32, i32
  }
  func.func @transform_1(%arg0: i32) -> (i32, i32) {
    %c0_i32 = arith.constant 0 : i32
    %c0_i32_0 = arith.constant 0 : i32
    %c0_i32_1 = arith.constant 0 : i32
    return %c0_i32, %c0_i32_0 : i32, i32
  }
  func.func @transform_2(%arg0: i32) -> (i32, i32) {
    %c0_i32 = arith.constant 0 : i32
    %c0_i32_0 = arith.constant 0 : i32
    %c0_i32_1 = arith.constant 0 : i32
    return %c0_i32, %c0_i32_0 : i32, i32
  }
  func.func @transform_3(%arg0: i32) -> (i32, i32) {
    %c0_i32 = arith.constant 0 : i32
    %c0_i32_0 = arith.constant 0 : i32
    %c0_i32_1 = arith.constant 0 : i32
    return %c0_i32, %c0_i32_0 : i32, i32
  }
  func.func @transform_4(%arg0: i32) -> (i32, i32) {
    %c0_i32 = arith.constant 0 : i32
    %c0_i32_0 = arith.constant 0 : i32
    %c0_i32_1 = arith.constant 0 : i32
    return %c0_i32, %c0_i32_0 : i32, i32
  }
  func.func @transform_5(%arg0: i32) -> (i32, i32, i32) {
    %c0_i32 = arith.constant 0 : i32
    %c0_i32_0 = arith.constant 0 : i32
    %c0_i32_1 = arith.constant 0 : i32
    return %arg0, %c0_i32, %c0_i32_0 : i32, i32, i32
  }
}

</mosaic_0001>

<bundles_post_ra>
// kernel: tpu_custom_call.1
= control target key start
LH: loop header
LB: loop body
LE: loop exit
PB: predicated region body
PF: predicated region fallthrough
CT: control target
= control target key end

     0   :  { %10 = vsyncpa [#allocation3], 0  ;;  %s1004_s0 = inlined_call_operand.hbm [shape: f32[2,16,256], index: 0, kind: input, shape index: {}]   ;;  %s1005_s1 = inlined_call_operand.vmem [shape: f32[16,1], index: 1, kind: input, shape index: {}]   ;;  %s1006_s2 = inlined_call_operand.vmem [shape: f32[16,1], index: 2, kind: input, shape index: {}]   ;;  %s1007_s3 = inlined_call_operand.vmem [shape: s32[16,1], index: 3, kind: input, shape index: {}]   ;;  %s1008_s4 = inlined_call_operand.vmem [shape: s32[1,16], index: 4, kind: input, shape index: {}]   ;;  %s1009_s5 = inlined_call_operand.hbm [shape: f32[2,16,256], index: 5, kind: output, shape index: {}]  }
   0x1   :  { %12 = vsyncpa [#allocation3 + $0x1], 0 }
   0x2   :  { %13 = vsyncpa [#allocation4], 0 }
   0x3   :  { %15 = vsyncpa [#allocation4 + $0x1], 0  ;;  %s821_s18 = smov 0   ;;  %s823_s19 = smov 0  }
   0x4   :  { %s825_s20 = smov 0   ;;  %s827_s21 = smov 0  }
   0x5 LB: > { %s842_s22 = sadd.s32 4294967295, %s781_s21   ;;  %s586_s23 = sadd.s32 4294967294, %s781_s21   ;;  %s781_s21 = sphi %s827_s21, %s1024_s21   ;;  %s777_s20 = sphi %s825_s20, %s1023_s20   ;;  %s773_s19 = sphi %s823_s19, %s1022_s19   ;;  %s769_s18 = sphi %s821_s18, %s1021_s18  }
   0x6   : > { %s846_s24 = sadd.s32 1, %s781_s21   ;;  %s28_s25 = sadd.s32 1, %s777_s20 }
   0x7   : > { %s25_s26 = ssub.s32 %s781_s21, %s846_s24  ;;  %p35_p0 = scmp.ne.s32.totalorder %s777_s20, %s773_s19 }
   0x8   : > { %p26_p1 = scmp.eq.s32.totalorder %s25_s26, 0  ;;  %p36_p2 = scmp.eq.s32.totalorder %s781_s21, 0 }
   0x9   : > { %p41_p3 = scmp.ne.s32.totalorder %s773_s19, %s769_s18  ;;  %p42_p4 = scmp.eq.s32.totalorder %s842_s22, 0 }
   0xa   : > { %s858_s27 = scalar_select %p26_p1, %s777_s20, %s28_s25  }
   0xb   : > { %p860_p5 = por %p36_p2, %p35_p0  ;;  %p864_p6 = por %p42_p4, %p41_p3 }
   0xc   : > { %p149_p7 = scmp.eq.s32.totalorder %s842_s22, 1  ;;  %p155_p8 = scmp.eq.s32.totalorder %s586_s23, 1 }
   0xd   : > { %s1013_s29 = scalar_select %p864_p6, 1, 0 }
   0xe   : > { %p643_p10 = scmp.lt.s32.totalorder %s781_s21, 2  ;;  %p871_p11 = por %p149_p7, %p35_p0 }
   0xf   : > { %p875_p12 = por %p155_p8, %p41_p3  ;;  %s187_s7 = sand.u32 1, %s777_s20  }
  0x10   : > { %s1014_s30 = scalar_select %p871_p11, 1, 0 }
  0x11   : > { %s1015_s6 = scalar_select %p875_p12, 1, 0 }
  0x12   : > { %s607_s8 = sshll.u32 %s781_s21, 9  ;;  %s589_s9 = sshll.u32 %s187_s7, 5 }
  0x13   : > { %s884_s12 = scalar_lea.hbm %s1004_s0, %s607_s8  ;;  %s191_s13 = scalar_lea.vmem [#allocation2], %s589_s9 }
  0x14   : > { %s198_s14 = sshll.u32 %s191_s13, 4  ;;  %p888_p13 = pnand %p643_p10, %p860_p5  ;;  %s892_s14 = int_to_ptr.vmem [resolvable:$true] %s198_s14 }
  0x15   : > { %s894_s16 = scalar_lea.sflag [#allocation3], %s187_s7  ;;  %s689_s17 = scalar_lea.hbm %s884_s12, 512 }
  0x16   : > { %p690_p0 = scmp.ne.s32.totalorder %s884_s12, %s689_s17  ;;  %p691_p1 = pneg %p888_p13 }
  0x17   : > { %s694_s26 = scalar_lea.hbm %s1004_s0, 1024  ;;  %p695_p4 = scmp.lt.s32.totalorder %s884_s12, %s1004_s0 }
  0x18   : > { %p692_p2 = pnand %p691_p1, %p690_p0  ;;  %p696_p5 = scmp.lt.s32.totalorder %s694_s26, %s689_s17 }
  0x1a   : > { %p693_p3 = pneg %p692_p2  ;;  %p697_p7 = por %p696_p5, %p695_p4 }
  0x1c   : > { %p698_p8 = pnand %p697_p7, %p693_p3 }
  0x1e   : > { %701 = shalt.err (!%p698_p8)
}
  0x1f   : > { %s702_s7 = scalar_lea.vmem %s892_s14, 512  ;;  %s783_s9 = smov [#allocation2]  }
  0x20   : > { %p703_p10 = scmp.ne.s32.totalorder %s892_s14, %s702_s7  ;;  %s707_s10 = sshll.u32 %s783_s9, 4  ;;  %s708_s10 = int_to_ptr.vmem [resolvable:$false] %s707_s10 }
  0x21   : > { %s709_s11 = scalar_lea.vmem %s708_s10, 1024  ;;  %p710_p2 = scmp.lt.s32.totalorder %s892_s14, %s708_s10 }
  0x22   : > { %p705_p9 = pnand %p703_p10, %p691_p1  ;;  %p711_p12 = scmp.lt.s32.totalorder %s709_s11, %s702_s7 }
  0x24   : > { %p706_p0 = pneg %p705_p9  ;;  %p712_p11 = por %p711_p12, %p710_p2 }
  0x26   : > { %p713_p6 = pnand %p712_p11, %p706_p0 }
  0x28   : > { %716 = shalt.err (!%p713_p6)
}
  0x29   : > { %s784_s13 = smov 256   ;;  %s785_s17 = smov 16  }
  0x2a   : > { %638 = dma.hbm_to_vmem [thread:$0]  (!%p888_p13), %s884_s12, 512, %s892_s14, %s894_s16, %s784_s13, %s784_s13, %s785_s17  }
  0x2b   : > { %p592_p9 = scmp.ge.s32.totalorder %s781_s21, 1  ;;  %p206_p1 = scmp.lt.s32.totalorder %s781_s21, 3 }
  0x2d   : > { %p207_p3 = pnand %p592_p9, %p206_p1 }
  0x2e   : > { %s918_s23 = sand.u32 (!%p207_p3), 1, %s773_s19   ;;  %p1017_p6 = scmp.ne.s32.totalorder (!%p207_p3), %s1013_s29, 0 }
  0x2f   : > { %210 = sbr.rel (%p207_p3) target bundleno = 1028 (0x404), region = 40  ;;  %s593_s25 = sshll.u32 (!%p207_p3), %s918_s23, 5 }
  0x30   : > { %s213_s26 = scalar_lea.sflag (!%p207_p3), [#allocation3], %s918_s23  ;;  %s216_s28 = scalar_lea.vmem (!%p207_p3), [#allocation2], %s593_s25 }
  0x34   : > { %760 = dma.done.wait (%p1017_p6), %s213_s26, 512  }
  0x35   : > { %762 = vsyncadd (%p1017_p6), %s213_s26, 4294966784  ;;  %v786_v0 = vmov 0   ;;  %v245_v1 = vld [vmem:[%s216_s28 + $0x10] sm:$0xff]  ;;  %v246_v2 = vld [vmem:[%s216_s28 + $0x18] sm:$0xff]  ;;  %vm272_vm0 = vcmask 130048   ;;  %v787_v11 = vmov 0.0  }
  0x36   : > { %683 = vset.pattern.permute.xlu1 %v786_v0  ;;  %684 = vset.pattern.permute.xlu0 %v786_v0  ;;  %v243_v3 = vld [vmem:[%s216_s28] sm:$0xff]  ;;  %v269_v4 = vadd.f32 %v246_v2, %v245_v1  ;;  %v244_v5 = vld [vmem:[%s216_s28 + $0x8] sm:$0xff]  ;;  %s242_s12 = scalar_lea.vmem [#allocation5], %s593_s25  ;;  %s608_s15 = sshll.u32 %s842_s22, 9 }
  0x37   : > { %v247_v6 = vld [vmem:[%s1007_s3] sm:$0xff]  ;;  %v266_v7 = vadd.f32 %v244_v5, %v243_v3  ;;  %v248_v8 = vld [vmem:[%s1007_s3 + $0x8] sm:$0xff]  ;;  %s513_s14 = sshll.u32 %s242_s12, 4  ;;  %s961_s25 = scalar_lea.hbm %s1009_s5, %s608_s15  ;;  %s956_s14 = int_to_ptr.vmem [resolvable:$true] %s513_s14 }
  0x38   : > { %251 = vperm.xlu1 %683, %v247_v6   ;;  %270 = vadd.xlane.f32.xlu0 %v269_v4  ;;  %v595_v9 = vld [vmem:[%s1008_s4] ss:$0 sm:$0xff]  ;;  %v462_v42 = vld [vmem:[%s1005_s1 + $0x8] sm:$0xff]  ;;  %s500_s22 = scalar_lea.sflag [#allocation4], %s918_s23  ;;  %s717_s8 = scalar_lea.vmem %s956_s14, 512 }
  0x39   : > { %v479_v21 = vld [vmem:[%s1006_s2] sm:$0xff]  ;;  %v480_v48 = vld [vmem:[%s1006_s2 + $0x8] sm:$0xff]  ;;  %p718_p11 = scmp.ne.s32.totalorder %s956_s14, %s717_s8  ;;  %p1018_p12 = scmp.ne.s32.totalorder %s1014_s30, 0 }
  0x3a   : > { %v461_v44 = vld [vmem:[%s1005_s1] sm:$0xff]  ;;  %s788_s7 = smov [#allocation5]  }
  0x3b   : > { %p719_p13 = pnand %p718_p11, %p1018_p12  ;;  %s721_s9 = sshll.u32 %s788_s7, 4  ;;  %s722_s9 = int_to_ptr.vmem [resolvable:$false] %s721_s9 }
  0x3c   : > { %254 = vperm.xlu1 %683, %v248_v8   ;;  %267 = vadd.xlane.f32.xlu0 %v266_v7  ;;  %s723_s10 = scalar_lea.vmem %s722_s9, 1024  ;;  %p724_p5 = scmp.lt.s32.totalorder %s956_s14, %s722_s9 }
  0x3d   : > { %p720_p4 = pneg %p719_p13  ;;  %p725_p7 = scmp.lt.s32.totalorder %s723_s10, %s717_s8 }
  0x3f   : > { %p726_p8 = por %p725_p7, %p724_p5 }
  0x41   : > { %p727_p10 = pnand %p726_p8, %p720_p4 }
  0xb3   : > { %v252_v10 = vpop.permute.xlu1 %251 }
  0xb4   : > { %vm260_vm1 = vcmp.eq.s32.totalorder %v252_v10, %v595_v9 }
  0xb5   : > { %v596_v12 = vsel %vm260_vm1, 1.0, %v787_v11 }
  0xb6   : > { %621 = vmatprep.mubr.msk.f32.mxu0 %vm272_vm0, %v596_v12  ;;  %628 = vmatprep.mubr.msk.f32.mxu1 %vm272_vm0, %v596_v12 }
  0xb7   : > { %v255_v13 = vpop.permute.xlu1 %254 }
  0xb8   : > { %vm261_vm2 = vcmp.eq.s32.totalorder %v255_v13, %v595_v9 }
  0xb9   : > { %v597_v16 = vsel %vm261_vm2, 1.0, %v787_v11 }
  0xc1   : > { %v271_v14 = vpop.xlane.xlu0 %270 }
  0xc2   : > { %617 = vmatprep.subr.mxu0 %v271_v14 }
  0xc3   : > { %618 = vmatpush3.msra.mxu0 %v271_v14 }
  0xc5   : > { %v268_v15 = vpop.xlane.xlu0 %267 }
  0xc6   : > { %619 = vmatprep.subr.mxu0 %v268_v15 }
  0xc7   : > { %620 = vmatpush3.msra.mxu0 %v268_v15 }
  0xc8   : > { %622 = vmatmul.mubr.msk.f32.vlgmr.msra.gmra.mxu0 %vm272_vm0, %v597_v16 }
 0x188   : > { %v623_v17 = vpop.f32.mrf.mxu0 }
 0x189   : > { %v355_v18 = vmul.f32 0.0009765625, %v623_v17 }
 0x18a   : > { %v345_v19 = vpop.f32.mrf.mxu0 }
 0x18b   : > { %v354_v20 = vmul.f32 0.0009765625, %v345_v19  ;;  %363 = vperm.xlu0 %684, %v355_v18  }
 0x18d   : > { %358 = vperm.xlu1 %683, %v354_v20  }
 0x18f   : > { %483 = vperm.xlu0 %684, %v479_v21  }
 0x206   : > { %v364_v22 = vpop.permute.xlu0 %363 }
 0x207   : > { %v368_v23 = vsub.f32 %v245_v1, %v364_v22  ;;  %v369_v24 = vsub.f32 %v246_v2, %v364_v22 }
 0x208   : > { %v359_v25 = vpop.permute.xlu1 %358 }
 0x209   : > { %v366_v26 = vsub.f32 %v243_v3, %v359_v25  ;;  %v367_v27 = vsub.f32 %v244_v5, %v359_v25  ;;  %v372_v28 = vmul.f32 %v368_v23, %v368_v23  ;;  %v373_v29 = vmul.f32 %v369_v24, %v369_v24 }
 0x20a   : > { %v484_v49 = vpop.permute.xlu0 %483 }
 0x20b   : > { %v377_v30 = vadd.f32 %v373_v29, %v372_v28  ;;  %v370_v31 = vmul.f32 %v366_v26, %v366_v26  ;;  %v371_v32 = vmul.f32 %v367_v27, %v367_v27 }
 0x20d   : > { %378 = vadd.xlane.f32.xlu1 %v377_v30  ;;  %v374_v33 = vadd.f32 %v371_v32, %v370_v31 }
 0x211   : > { %375 = vadd.xlane.f32.xlu1 %v374_v33 }
 0x296   : > { %v379_v34 = vpop.xlane.xlu1 %378 }
 0x297   : > { %624 = vmatprep.subr.mxu1 %v379_v34 }
 0x298   : > { %625 = vmatpush3.msra.mxu1 %v379_v34 }
 0x29a   : > { %v376_v35 = vpop.xlane.xlu1 %375 }
 0x29b   : > { %626 = vmatprep.subr.mxu1 %v376_v35 }
 0x29c   : > { %627 = vmatpush3.msra.mxu1 %v376_v35 }
 0x29d   : > { %629 = vmatmul.mubr.msk.f32.vlgmr.msra.gmra.mxu1 %vm272_vm0, %v597_v16 }
 0x35d   : > { %v630_v36 = vpop.f32.mrf.mxu1 }
 0x35e   : > { %v456_v37 = vmul.f32 0.0009765625, %v630_v36 }
 0x35f   : > { %v446_v38 = vpop.f32.mrf.mxu1 }
 0x360   : > { %v458_v39 = vadd.f32 1e-05, %v456_v37  ;;  %v455_v40 = vmul.f32 0.0009765625, %v446_v38 }
 0x362   : > { %685 = vrsqrt.f32 %v458_v39  ;;  %v457_v41 = vadd.f32 1e-05, %v455_v40 }
 0x364   : > { %687 = vrsqrt.f32 %v457_v41 }
 0x36f   : > { %v686_v43 = vpop.eup %685 }
 0x370   : > { %v464_v45 = vmul.f32 %v686_v43, %v462_v42 }
 0x371   : > { %v688_v46 = vpop.eup %687 }
 0x372   : > { %472 = vperm.xlu1 %683, %v464_v45   ;;  %v463_v47 = vmul.f32 %v688_v46, %v461_v44 }
 0x374   : > { %467 = vperm.xlu0 %684, %v463_v47  }
 0x378   : > { %488 = vperm.xlu0 %684, %v480_v48  }
 0x3ed   : > { %v473_v50 = vpop.permute.xlu1 %472 }
 0x3ee   : > { %v477_v54 = vmul.f32 %v473_v50, %v368_v23  ;;  %v478_v55 = vmul.f32 %v473_v50, %v369_v24 }
 0x3ef   : > { %v468_v51 = vpop.permute.xlu0 %467 }
 0x3f0   : > { %v475_v52 = vmul.f32 %v468_v51, %v366_v26  ;;  %v476_v53 = vmul.f32 %v468_v51, %v367_v27 }
 0x3f2   : > { %v491_v56 = vadd.f32 %v484_v49, %v475_v52  ;;  %v492_v57 = vadd.f32 %v484_v49, %v476_v53 }
 0x3f3   : > { %v489_v58 = vpop.permute.xlu0 %488 }
 0x3f4   : > { %495 = vst [vmem:[%s242_s12] sm:$0xff] %v491_v56  ;;  %496 = vst [vmem:[%s242_s12 + $0x8] sm:$0xff] %v492_v57  ;;  %v493_v59 = vadd.f32 %v489_v58, %v477_v54  ;;  %v494_v60 = vadd.f32 %v489_v58, %v478_v55 }
 0x3f6   : > { %497 = vst [vmem:[%s242_s12 + $0x10] sm:$0xff] %v493_v59  ;;  %498 = vst [vmem:[%s242_s12 + $0x18] sm:$0xff] %v494_v60 }
 0x3f7   : > { %730 = shalt.err (!%p727_p10)
}
 0x3f8   : > { %s731_s11 = scalar_lea.hbm %s961_s25, 512  ;;  %s735_s26 = scalar_lea.hbm %s1009_s5, 1024 }
 0x3f9   : > { %p732_p0 = scmp.ne.s32.totalorder %s961_s25, %s731_s11  ;;  %p736_p1 = scmp.lt.s32.totalorder %s961_s25, %s1009_s5 }
 0x3fa   : > { %p737_p3 = scmp.lt.s32.totalorder %s735_s26, %s731_s11 }
 0x3fb   : > { %p733_p2 = pnand %p732_p0, %p1018_p12 }
 0x3fc   : > { %p738_p6 = por %p737_p3, %p736_p1 }
 0x3fd   : > { %p734_p9 = pneg %p733_p2 }
 0x3ff   : > { %p739_p11 = pnand %p738_p6, %p734_p9 }
 0x401   : > { %742 = shalt.err (!%p739_p11)
}
 0x402   : > { %s789_s15 = smov 256   ;;  %s790_s16 = smov 16  }
 0x403   : > { %633 = dma.vmem_to_hbm [thread:$0]  (%p1018_p12), %s956_s14, 512, %s961_s25, %s500_s22, %s789_s15, %s789_s15, %s790_s16  }
 0x404 PF: > { %s528_s29 = sand.u32 1, %s769_s18   ;;  %p1019_p13 = scmp.ne.s32.totalorder %s1015_s6, 0 }
 0x405   : > { %p1020_p4 = scmp.ge.s32.totalorder %s781_s21, 2  ;;  %s529_s8 = scalar_lea.sflag [#allocation4], %s528_s29 }
 0x407   : > { %p640_p5 = pnand %p1020_p4, %p1019_p13 }
 0x409   : > { %p641_p7 = pneg %p640_p5 }
 0x40b   : > { %764 = dma.done.wait (%p641_p7), %s529_s8, 512  }
 0x40c   : > { %766 = vsyncadd (%p641_p7), %s529_s8, 4294966784  ;;  %p18_p8 = scmp.ge.s32.totalorder %s846_s24, 4   ;;  %s1021_s18 = smov %s773_s19 }
 0x40d   : > { %s1022_s19 = smov %s777_s20  ;;  %s1023_s20 = smov %s858_s27 }
 0x40e   : > { %s1024_s21 = smov %s846_s24  ;;  %20 = sbr.rel (!%p18_p8) target bundleno = 5 (0x5), region = 85 }
 0x413   :  { %534 = vsyncpa [#allocation3], 1 }
 0x414   :  { %536 = vsyncpa [#allocation3 + $0x1], 1 }
 0x415   :  { %537 = vsyncpa [#allocation4], 1 }
 0x416   :  { %539 = vsyncpa [#allocation4 + $0x1], 1 }

</bundles_post_ra>
